<compile_context>
chip_gen: v5e
topology: v5e:2x2
jax: 0.10.0
libtpu: 0.0.40
codegen_flags: <defaults>
</compile_context>

<pallas_src>
import jax
import jax.numpy as jnp
from jax import lax
from jax.experimental import pallas as pl
from jax.experimental.pallas import tpu as pltpu

_LANE = 128            # vreg lane width  -> RHS / gram lane-dim padding granularity
_SUBLANE = 16          # bf16 sublane tile -> LHS row padding granularity
_VMEM_BUDGET = 40 << 20       # working-set target (safe under v7x's 64 MiB physical VMEM)
_VMEM_LIMIT_CAP = 48 << 20    # never ask Mosaic for more scoped VMEM than this


def _round_up(n, m):
    return (n + m - 1) // m * m


def _pick_tk(K, C_sub, C_lane, itemsize, tk_max):
    """Largest K-tile (multiple of 128) that fits the VMEM budget; prefer a divisor of K."""
    fixed = 4 * C_sub * C_lane * 4 + (1 << 20)      # target + gram buffers + margin
    per_tk = 2 * C_lane * itemsize                  # double-buffered feature tile rows
    tk_fit = max(_LANE, (_VMEM_BUDGET - fixed) // per_tk // _LANE * _LANE)
    tk_cap = min(tk_max, tk_fit, _round_up(K, _LANE))
    if K % _LANE == 0:
        # Prefer a tile that divides K (no masked remainder tile), but don't shrink
        # below ~512 just for divisibility.
        floor = max(_LANE, min(tk_cap, 512))
        for cand in range(tk_cap, floor - 1, -_LANE):
            if K % cand == 0:
                return cand
    return tk_cap


def _make_style_loss_kernel(*, scale, inv_nelem, C, C_sub, C_lane, K, TK):
    """Build the kernel closure with all static shape parameters baked in."""
    needs_k_mask = (K % TK) != 0                 # last K tile has garbage OOB lanes
    needs_c_mask = (C_sub > C) or (C_lane > C)   # padded gram rows/cols hold garbage

    def kernel(feat_ref, target_ref, g_ref, loss_ref):
        # feat_ref   : (C_lane, TK) feature tile; rows >= C / lanes >= K are garbage (no HBM pad)
        # target_ref : (C_sub, C_lane) weighted target gram, f32, zero-padded (tiny)
        # g_ref      : (C_sub, C_lane) f32 weighted gram output == resident accumulator
        # loss_ref   : (1, 1) SMEM scalar MSE loss
        k = pl.program_id(0)

        @pl.when(k == 0)
        def _init():
            g_ref[...] = jnp.zeros_like(g_ref)

        f = feat_ref[...]
        if f.dtype != jnp.bfloat16:
            f = f.astype(jnp.bfloat16)           # MXU-native rate; skipped for bf16 producers
        if needs_k_mask:
            valid = K - k * TK                   # mask the garbage lanes of the last tile
            lane = lax.broadcasted_iota(jnp.int32, (C_lane, TK), 1)
            f = jnp.where(lane < valid, f, jnp.zeros_like(f))

        # LHS only needs sublane-tile rows: static row-slice of the already-loaded tile
        # (no second feature DMA, no extra HBM traffic).
        lhs = f[:C_sub, :] if C_sub < C_lane else f

        # f @ f.T: contract the last dim of both operands (no transpose / XLU traffic);
        # accumulate straight into the resident f32 output block.
        g_ref[...] += lax.dot_general(
            lhs, f,
            dimension_numbers=(((1,), (1,)), ((), ())),
            preferred_element_type=jnp.float32,
        )

        @pl.when(k == pl.num_programs(0) - 1)
        def _finalize():
            gw = g_ref[...] * scale              # (1/(a*b*c*d)) * weight
            g_ref[...] = gw
            diff = gw - target_ref[...]
            if needs_c_mask:
                row = lax.broadcasted_iota(jnp.int32, (C_sub, C_lane), 0)
                col = lax.broadcasted_iota(jnp.int32, (C_sub, C_lane), 1)
                diff = jnp.where((row < C) & (col < C), diff, 0.0)
            loss_ref[0, 0] = jnp.sum(diff * diff) * inv_nelem   # mean over the valid C*C entries

    return kernel


def gram_matrix_ref(x):
    """Pure-JAX f32 gram (exact PyTorch GramMatrix semantics) — used to build targets / refs."""
    a, b, c, d = x.shape
    f = x.reshape(a * b, c * d).astype(jnp.float32)
    return (f @ f.T) / float(a * b * c * d)


def style_loss_forward(x, target, weight, *, tk_max=2048):
    """Pallas-backed StyleLoss.forward.

    Returns (output, G, loss): output == input (the .clone()), G is the weighted
    gram, loss the MSE vs target — matching the attributes the PyTorch module stores.
    """
    a, b, c, d = x.shape
    C, K = a * b, c * d
    norm = float(a * b * c * d)

    feats = x.reshape(C, K)                      # no pad / no cast: feature HBM traffic stays 1x
    itemsize = jnp.dtype(feats.dtype).itemsize

    C_sub = _round_up(C, _SUBLANE)               # LHS rows / gram sublane dim
    C_lane = _round_up(C, _LANE)                 # RHS rows / gram lane dim (lane-dense stores)

    TK = _pick_tk(K, C_sub, C_lane, itemsize, tk_max)
    n_k = pl.cdiv(K, TK)

    target = jnp.asarray(target, jnp.float32)
    if target.shape != (C_sub, C_lane):          # tiny (C x C) pad only — NOT the feature map
        target = jnp.pad(target, ((0, C_sub - C), (0, C_lane - C)))

    kernel = _make_style_loss_kernel(
        scale=float(weight) / norm,
        inv_nelem=1.0 / float(C * C),
        C=C, C_sub=C_sub, C_lane=C_lane, K=K, TK=TK,
    )

    # VMEM: double-buffered feature tiles + (double-buffered) target + resident gram.
    vmem_est = 2 * C_lane * TK * itemsize + 4 * C_sub * C_lane * 4 + (1 << 20)
    vmem_limit = int(min(_VMEM_LIMIT_CAP, max(32 << 20, vmem_est)))

    cost = pl.CostEstimate(
        flops=2 * C_sub * C_lane * n_k * TK,
        transcendentals=0,
        bytes_accessed=C * K * itemsize + 2 * C_sub * C_lane * 4 + 4,
    )

    g_pad, loss = pl.pallas_call(
        kernel,
        out_shape=(
            jax.ShapeDtypeStruct((C_sub, C_lane), jnp.float32),
            jax.ShapeDtypeStruct((1, 1), jnp.float32),
        ),
        grid_spec=pltpu.PrefetchScalarGridSpec(
            num_scalar_prefetch=0,
            grid=(n_k,),
            in_specs=[
                pl.BlockSpec((C_lane, TK), lambda k: (0, k)),      # feature K-tiles
                pl.BlockSpec((C_sub, C_lane), lambda k: (0, 0)),   # target gram (resident)
            ],
            out_specs=(
                pl.BlockSpec((C_sub, C_lane), lambda k: (0, 0)),   # gram output == accumulator
                pl.BlockSpec(memory_space=pltpu.MemorySpace.SMEM), # scalar loss via SMEM
            ),
        ),
        compiler_params=pltpu.CompilerParams(
            dimension_semantics=("arbitrary",),   # K is a reduction axis
            vmem_limit_bytes=vmem_limit,
        ),
        cost_estimate=cost,
    )(feats, target)

    G = g_pad[:C, :C]
    output = x   # .clone() — functional JAX: returning x is semantically identical
    return output, G, loss[0, 0]


if __name__ == "__main__":
    key = jax.random.PRNGKey(0)
    k_in, k_style = jax.random.split(key)

    # Small shapes consistent with a conv feature map: NCHW = (2, 4, 16, 16)
    a, b, c, d = 2, 4, 16, 16
    weight = 1000.0

    x = jax.random.normal(k_in, (a, b, c, d), dtype=jnp.float32)
    style = jax.random.normal(k_style, (a, b, c, d), dtype=jnp.float32)

    # __init__: self.target = gram(style_features).detach() * weight  (f32, like PyTorch)
    target = gram_matrix_ref(style) * weight

    output, G, loss = style_loss_forward(x, target, weight)
    jax.block_until_ready((output, G, loss))

    # ---- correctness checks ----
    # (1) matched-precision reference: bf16 MXU inputs, f32 accumulation (tight)
    f = x.reshape(a * b, c * d)
    fb = f.astype(jnp.bfloat16)
    G_bf16 = lax.dot_general(fb, fb, (((1,), (1,)), ((), ())),
                             preferred_element_type=jnp.float32)
    G_bf16 = G_bf16 * (weight / float(a * b * c * d))
    loss_bf16 = jnp.mean((G_bf16 - target) ** 2)

    # (2) pure-f32 reference (exact PyTorch numerics) — loose bound on bf16-input error
    G_f32 = gram_matrix_ref(x) * weight
    loss_f32 = jnp.mean((G_f32 - target) ** 2)

    assert jnp.allclose(output, x), "output must be an unmodified clone of input"
    assert jnp.allclose(G, G_bf16, rtol=1e-3, atol=1e-2), "gram mismatch (matched precision)"
    assert jnp.allclose(loss, loss_bf16, rtol=1e-3, atol=1e-2), "loss mismatch (matched precision)"
    assert jnp.allclose(G, G_f32, rtol=3e-2, atol=0.5), "gram drifted too far from f32 reference"
    assert jnp.allclose(loss, loss_f32, rtol=5e-2, atol=1.0), "loss drifted too far from f32 reference"

    print("KERNEL_OK")
</pallas_src>

<mosaic_0001>
module attributes {stable_mosaic.version = 11 : i64} {
  func.func @kernel(%arg0: i32, %arg1: memref<128x256xf32, #tpu.memory_space<vmem>>, %arg2: memref<16x128xf32, #tpu.memory_space<vmem>>, %arg3: memref<16x128xf32, #tpu.memory_space<vmem>>, %arg4: memref<1x1xf32, #tpu.memory_space<smem>>) attributes {dimension_semantics = [#tpu.dimension_semantics<arbitrary>], iteration_bounds = array<i64: 1>, scalar_prefetch = 0 : i64, scratch_operands = 0 : i64, tpu.core_type = #tpu.core_type<tc>, window_params = [{transform_indices = @transform_0, window_bounds = array<i64: 128, 256>}, {pipeline_mode = #tpu.pipeline_mode<synchronous>, transform_indices = @transform_1, window_bounds = array<i64: 16, 128>}, {pipeline_mode = #tpu.pipeline_mode<synchronous>, transform_indices = @transform_2, window_bounds = array<i64: 16, 128>}, {transform_indices = @transform_3, window_bounds = array<i64: 1, 1>}]} {
    %c0_i32 = arith.constant 0 : i32
    %0 = arith.cmpi eq, %arg0, %c0_i32 : i32
    %1 = arith.extui %0 : i1 to i32
    %c0_i32_0 = arith.constant 0 : i32
    %2 = arith.cmpi ne, %1, %c0_i32_0 : i32
    scf.if %2 {
      %cst_8 = arith.constant 0.000000e+00 : f32
      %13 = vector.broadcast %cst_8 : f32 to vector<16x128xf32>
      %c0_9 = arith.constant 0 : index
      %c0_10 = arith.constant 0 : index
      %14 = vector.load %arg3[%c0_9, %c0_10] : memref<16x128xf32, #tpu.memory_space<vmem>>, vector<16x128xf32>
      tpu.vector_store %arg3[%c0_9, %c0_10], %13 {strides = array<i32>} : memref<16x128xf32, #tpu.memory_space<vmem>>, vector<16x128xf32>,
    } else {
    }
    %c0 = arith.constant 0 : index
    %c0_1 = arith.constant 0 : index
    %3 = vector.load %arg1[%c0, %c0_1] : memref<128x256xf32, #tpu.memory_space<vmem>>, vector<128x256xf32>
    %4 = arith.truncf %3 : vector<128x256xf32> to vector<128x256xbf16>
    %5 = vector.extract_strided_slice %4 {offsets = [0, 0], sizes = [16, 256], strides = [1, 1]} : vector<128x256xbf16> to vector<16x256xbf16>
    %c0_2 = arith.constant 0 : index
    %c0_3 = arith.constant 0 : index
    %6 = vector.load %arg3[%c0_2, %c0_3] : memref<16x128xf32, #tpu.memory_space<vmem>>, vector<16x128xf32>
    %cst = arith.constant dense<0.000000e+00> : vector<16x128xf32>
    %7 = tpu.matmul %5, %4, %cst {dimension_numbers = #tpu.dot_dimension_numbers<[1], [1], [0], [0], [0, 0, 1, 0], [], []>} : vector<16x256xbf16>, vector<128x256xbf16>, vector<16x128xf32> -> vector<16x128xf32>
    %8 = arith.addf %6, %7 : vector<16x128xf32>
    %c0_4 = arith.constant 0 : index
    %c0_5 = arith.constant 0 : index
    %9 = vector.load %arg3[%c0_4, %c0_5] : memref<16x128xf32, #tpu.memory_space<vmem>>, vector<16x128xf32>
    tpu.vector_store %arg3[%c0_4, %c0_5], %8 {strides = array<i32>} : memref<16x128xf32, #tpu.memory_space<vmem>>, vector<16x128xf32>,
    %c0_i32_6 = arith.constant 0 : i32
    %10 = arith.cmpi eq, %arg0, %c0_i32_6 : i32
    %11 = arith.extui %10 : i1 to i32
    %c0_i32_7 = arith.constant 0 : i32
    %12 = arith.cmpi ne, %11, %c0_i32_7 : i32
    scf.if %12 {
      %c0_8 = arith.constant 0 : index
      %c0_9 = arith.constant 0 : index
      %13 = vector.load %arg3[%c0_8, %c0_9] : memref<16x128xf32, #tpu.memory_space<vmem>>, vector<16x128xf32>
      %cst_10 = arith.constant 0.48828125 : f32
      %14 = vector.broadcast %cst_10 : f32 to vector<16x128xf32>
      %15 = arith.mulf %13, %14 : vector<16x128xf32>
      %c0_11 = arith.constant 0 : index
      %c0_12 = arith.constant 0 : index
      %16 = vector.load %arg3[%c0_11, %c0_12] : memref<16x128xf32, #tpu.memory_space<vmem>>, vector<16x128xf32>
      tpu.vector_store %arg3[%c0_11, %c0_12], %15 {strides = array<i32>} : memref<16x128xf32, #tpu.memory_space<vmem>>, vector<16x128xf32>,
      %c0_13 = arith.constant 0 : index
      %c0_14 = arith.constant 0 : index
      %17 = vector.load %arg2[%c0_13, %c0_14] : memref<16x128xf32, #tpu.memory_space<vmem>>, vector<16x128xf32>
      %18 = arith.subf %15, %17 : vector<16x128xf32>
      %19 = tpu.iota {dimensions = array<i32: 0>} : vector<16x128xi32>
      %20 = tpu.iota {dimensions = array<i32: 1>} : vector<16x128xi32>
      %c8_i32 = arith.constant 8 : i32
      %21 = vector.broadcast %c8_i32 : i32 to vector<16x128xi32>
      %22 = arith.cmpi slt, %19, %21 : vector<16x128xi32>
      %c8_i32_15 = arith.constant 8 : i32
      %23 = vector.broadcast %c8_i32_15 : i32 to vector<16x128xi32>
      %24 = arith.cmpi slt, %20, %23 : vector<16x128xi32>
      %25 = arith.andi %22, %24 : vector<16x128xi1>
      %cst_16 = arith.constant 0.000000e+00 : f32
      %26 = vector.broadcast %cst_16 : f32 to vector<16x128xf32>
      %27 = arith.select %25, %18, %26 : vector<16x128xi1>, vector<16x128xf32>
      %28 = arith.mulf %27, %27 : vector<16x128xf32>
      %29 = vector.shape_cast %28 : vector<16x128xf32> to vector<1x16x128xf32>
      %cst_17 = arith.constant dense<0.000000e+00> : vector<1xf32>
      %30 = vector.multi_reduction <add>, %29, %cst_17 [1, 2] : vector<1x16x128xf32> to vector<1xf32>
      %31 = vector.shape_cast %30 : vector<1xf32> to vector<1x1x1xf32>
      %32 = vector.extract %31[0, 0, 0] : f32 from vector<1x1x1xf32>
      %cst_18 = arith.constant 1.562500e-02 : f32
      %33 = arith.mulf %32, %cst_18 : f32
      %c0_19 = arith.constant 0 : index
      %c0_20 = arith.constant 0 : index
      %34 = memref.load %arg4[%c0_19, %c0_20] : memref<1x1xf32, #tpu.memory_space<smem>>
      memref.store %33, %arg4[%c0_19, %c0_20] : memref<1x1xf32, #tpu.memory_space<smem>>
    } else {
    }
    return
  }
  func.func @transform_0(%arg0: i32) -> (i32, i32) {
    %c0_i32 = arith.constant 0 : i32
    %c0_i32_0 = arith.constant 0 : i32
    return %c0_i32, %arg0 : i32, i32
  }
  func.func @transform_1(%arg0: i32) -> (i32, i32) {
    %c0_i32 = arith.constant 0 : i32
    %c0_i32_0 = arith.constant 0 : i32
    %c0_i32_1 = arith.constant 0 : i32
    return %c0_i32, %c0_i32_0 : i32, i32
  }
  func.func @transform_2(%arg0: i32) -> (i32, i32) {
    %c0_i32 = arith.constant 0 : i32
    %c0_i32_0 = arith.constant 0 : i32
    %c0_i32_1 = arith.constant 0 : i32
    return %c0_i32, %c0_i32_0 : i32, i32
  }
  func.func @transform_3(%arg0: i32) -> (i32, i32) {
    %c0_i32 = arith.constant 0 : i32
    %c0_i32_0 = arith.constant 0 : i32
    %c0_i32_1 = arith.constant 0 : i32
    return %c0_i32, %c0_i32_0 : i32, i32
  }
}

</mosaic_0001>

<bundles_post_ra>
// kernel: tpu_custom_call.1
= control target key start
LH: loop header
LB: loop body
LE: loop exit
PB: predicated region body
PF: predicated region fallthrough
CT: control target
= control target key end

     0   :  { %9 = vsyncpa [#allocation3], 0  ;;  %s439_s0 = inlined_call_operand.hbm [shape: f32[8,256], index: 0, kind: input, shape index: {}]   ;;  %s440_s1 = inlined_call_operand.hbm [shape: f32[16,128], index: 1, kind: input, shape index: {}]   ;;  %s441_s2 = inlined_call_operand.hbm [shape: f32[16,128], index: 2, kind: output, shape index: {0}]   ;;  %s442_s3 = inlined_call_operand.hbm [shape: f32[1,1], index: 3, kind: output, shape index: {1}]  }
   0x1   :  { %10 = vsyncpa [#allocation7], 0 }
   0x2   :  { %11 = vsyncpa [#allocation4], 0 }
   0x3   :  { %12 = vsyncpa [#allocation5], 0 }
   0x4   :  { %16 = vsyncadd [#allocation3], 3840  ;;  %s17_s14 = sshll.u32 %s439_s0, 4  ;;  %s393_s15 = smov [#allocation2]   ;;  %s18_s14 = int_to_ptr.hbm [resolvable:$true] %s17_s14 }
   0x5   :  { %s19_s16 = sshll.u32 %s393_s15, 4  ;;  %s30_s19 = sshll.u32 %s440_s1, 4  ;;  %s20_s16 = int_to_ptr.vmem [resolvable:$true] %s19_s16  ;;  %s31_s19 = int_to_ptr.hbm [resolvable:$true] %s30_s19 }
   0x6   :  { %s394_s20 = smov 256   ;;  %s395_s21 = smov 16  }
   0x7   :  { %25 = dma.hbm_to_vmem [thread:$0]  %s18_s14, 256, %s20_s16, [#allocation3], %s394_s20, %s394_s20, %s395_s21  }
   0x8   :  { %s396_s22 = smov [#allocation6]   ;;  %s397_s24 = smov 128  }
   0x9   :  { %s32_s23 = sshll.u32 %s396_s22, 4  ;;  %s398_s25 = smov 8   ;;  %s33_s23 = int_to_ptr.vmem [resolvable:$true] %s32_s23 }
   0xa   :  { %38 = dma.hbm_to_vmem [thread:$0]  %s31_s19, 256, %s33_s23, [#allocation7], %s397_s24, %s397_s24, %s398_s25  }
   0xb   :  { %385 = dma.done.wait [#allocation3], 4096  }
   0xc   :  { %386 = vsyncadd [#allocation3], 4294963200 }
   0xd   :  { %387 = dma.done.wait [#allocation7], 256  }
   0xe   :  { %388 = vsyncadd [#allocation7], 4294967040  ;;  %v81_v0 = vld [vmem:[#allocation2 + $0xe0] sm:$0xff]  ;;  %v82_v1 = vld [vmem:[#allocation2 + $0xe8] sm:$0xff]  ;;  %s399_s0 = smov [#allocation8]   ;;  %s261_s28 = sshll.u32 %s441_s2, 4  ;;  %s262_s28 = int_to_ptr.hbm [resolvable:$true] %s261_s28 }
   0xf   :  { %v83_v2 = vld [vmem:[#allocation2 + $0xf0] sm:$0xff]  ;;  %v84_v3 = vld [vmem:[#allocation2 + $0xf8] sm:$0xff]  ;;  %v99_v4 = vpack.c.bf16 %v82_v1, %v81_v0  ;;  %v77_v5 = vld [vmem:[#allocation2 + $0xc0] sm:$0xff]  ;;  %s259_s1 = sshll.u32 %s399_s0, 4  ;;  %s273_s4 = sshll.u32 %s442_s3, 4  ;;  %s260_s1 = int_to_ptr.vmem [resolvable:$true] %s259_s1  ;;  %s274_s4 = int_to_ptr.hbm [resolvable:$true] %s273_s4 }
  0x10   :  { %v78_v6 = vld [vmem:[#allocation2 + $0xc8] sm:$0xff]  ;;  %v100_v7 = vpack.c.bf16 %v84_v3, %v83_v2  ;;  %v79_v8 = vld [vmem:[#allocation2 + $0xd0] sm:$0xff]  ;;  %v80_v9 = vld [vmem:[#allocation2 + $0xd8] sm:$0xff]  ;;  %s400_s6 = smov [#allocation9]  }
  0x11   :  { %v151_v10 = vunpack.c.l.b16 %v99_v4  ;;  %v152_v11 = vunpack.c.h.b16 %v99_v4  ;;  %v97_v14 = vpack.c.bf16 %v78_v6, %v77_v5  ;;  %v98_v15 = vpack.c.bf16 %v80_v9, %v79_v8  ;;  %v73_v22 = vld [vmem:[#allocation2 + $0xa0] sm:$0xff]  ;;  %v74_v23 = vld [vmem:[#allocation2 + $0xa8] sm:$0xff]  ;;  %v75_v24 = vld [vmem:[#allocation2 + $0xb0] sm:$0xff] }
  0x12   :  { %v153_v12 = vunpack.c.l.b16 %v100_v7  ;;  %v154_v13 = vunpack.c.h.b16 %v100_v7  ;;  %v76_v25 = vld [vmem:[#allocation2 + $0xb8] sm:$0xff]  ;;  %v95_v28 = vpack.c.bf16 %v74_v23, %v73_v22  ;;  %v69_v34 = vld [vmem:[#allocation2 + $0x80] sm:$0xff]  ;;  %v70_v35 = vld [vmem:[#allocation2 + $0x88] sm:$0xff] }
  0x13   :  { %v147_v18 = vunpack.c.l.b16 %v97_v14  ;;  %v149_v19 = vunpack.c.l.b16 %v98_v15  ;;  %v148_v20 = vunpack.c.h.b16 %v97_v14  ;;  %v150_v21 = vunpack.c.h.b16 %v98_v15  ;;  %v71_v36 = vld [vmem:[#allocation2 + $0x90] sm:$0xff]  ;;  %v72_v37 = vld [vmem:[#allocation2 + $0x98] sm:$0xff]  ;;  %v65_v46 = vld [vmem:[#allocation2 + $0x60] sm:$0xff] }
  0x14   :  { %v167_v16 = vpack.c.b16 %v153_v12, %v151_v10  ;;  %v168_v17 = vpack.c.b16 %v154_v13, %v152_v11  ;;  %v96_v29 = vpack.c.bf16 %v76_v25, %v75_v24  ;;  %v143_v30 = vunpack.c.l.b16 %v95_v28  ;;  %v66_v47 = vld [vmem:[#allocation2 + $0x68] sm:$0xff]  ;;  %v67_v48 = vld [vmem:[#allocation2 + $0x70] sm:$0xff]  ;;  %v68_v49 = vld [vmem:[#allocation2 + $0x78] sm:$0xff] }
  0x15   :  { %v165_v26 = vpack.c.b16 %v149_v19, %v147_v18  ;;  %v166_v27 = vpack.c.b16 %v150_v21, %v148_v20  ;;  %v144_v32 = vunpack.c.h.b16 %v95_v28  ;;  %v93_v40 = vpack.c.bf16 %v70_v35, %v69_v34  ;;  %v61_v58 = vld [vmem:[#allocation2 + $0x40] sm:$0xff]  ;;  %v62_v59 = vld [vmem:[#allocation2 + $0x48] sm:$0xff]  ;;  %v63_v60 = vld [vmem:[#allocation2 + $0x50] sm:$0xff] }
  0x16   :  { %183 = vmatpush.bf16.xpose.msra.mxu0 %v167_v16  ;;  %197 = vmatpush.bf16.xpose.msra.mxu1 %v168_v17  ;;  %v145_v31 = vunpack.c.l.b16 %v96_v29  ;;  %v146_v33 = vunpack.c.h.b16 %v96_v29  ;;  %v94_v41 = vpack.c.bf16 %v72_v37, %v71_v36  ;;  %v91_v52 = vpack.c.bf16 %v66_v47, %v65_v46  ;;  %v64_v61 = vld [vmem:[#allocation2 + $0x58] sm:$0xff]  ;;  %v57_v6 = vld [vmem:[#allocation2 + $0x20] sm:$0xff]  ;;  %v58_v7 = vld [vmem:[#allocation2 + $0x28] sm:$0xff] }
  0x17   :  { %v139_v42 = vunpack.c.l.b16 %v93_v40  ;;  %v140_v44 = vunpack.c.h.b16 %v93_v40  ;;  %v92_v53 = vpack.c.bf16 %v68_v49, %v67_v48  ;;  %v89_v0 = vpack.c.bf16 %v62_v59, %v61_v58  ;;  %v59_v8 = vld [vmem:[#allocation2 + $0x30] sm:$0xff]  ;;  %v60_v9 = vld [vmem:[#allocation2 + $0x38] sm:$0xff]  ;;  %v53_v18 = vld [vmem:[#allocation2] sm:$0xff] }
  0x18   :  { %v163_v38 = vpack.c.b16 %v145_v31, %v143_v30  ;;  %v164_v39 = vpack.c.b16 %v146_v33, %v144_v32  ;;  %v141_v43 = vunpack.c.l.b16 %v94_v41  ;;  %v142_v45 = vunpack.c.h.b16 %v94_v41  ;;  %v54_v19 = vld [vmem:[#allocation2 + $0x8] sm:$0xff]  ;;  %v55_v20 = vld [vmem:[#allocation2 + $0x10] sm:$0xff]  ;;  %v56_v21 = vld [vmem:[#allocation2 + $0x18] sm:$0xff] }
  0x19   :  { %v135_v54 = vunpack.c.l.b16 %v91_v52  ;;  %v137_v55 = vunpack.c.l.b16 %v92_v53  ;;  %v136_v56 = vunpack.c.h.b16 %v91_v52  ;;  %v138_v57 = vunpack.c.h.b16 %v92_v53  ;;  %v224_v37 = vld [vmem:[#allocation6] sm:$0xff] }
  0x1a   :  { %v161_v50 = vpack.c.b16 %v141_v43, %v139_v42  ;;  %v162_v51 = vpack.c.b16 %v142_v45, %v140_v44  ;;  %v90_v1 = vpack.c.bf16 %v64_v61, %v63_v60  ;;  %v131_v2 = vunpack.c.l.b16 %v89_v0 }
  0x1b   :  { %v159_v62 = vpack.c.b16 %v137_v55, %v135_v54  ;;  %v160_v63 = vpack.c.b16 %v138_v57, %v136_v56  ;;  %v132_v4 = vunpack.c.h.b16 %v89_v0  ;;  %v87_v12 = vpack.c.bf16 %v58_v7, %v57_v6 }
  0x1c   :  { %v133_v3 = vunpack.c.l.b16 %v90_v1  ;;  %v134_v5 = vunpack.c.h.b16 %v90_v1  ;;  %v88_v13 = vpack.c.bf16 %v60_v9, %v59_v8  ;;  %v85_v24 = vpack.c.bf16 %v54_v19, %v53_v18 }
  0x1d   :  { %v127_v14 = vunpack.c.l.b16 %v87_v12  ;;  %v128_v16 = vunpack.c.h.b16 %v87_v12  ;;  %v86_v25 = vpack.c.bf16 %v56_v21, %v55_v20  ;;  %v231_v32 = vlaneseq }
  0x1e   :  { %184 = vmatpush.bf16.xpose.msra.mxu0 %v165_v26  ;;  %198 = vmatpush.bf16.xpose.msra.mxu1 %v166_v27  ;;  %v157_v10 = vpack.c.b16 %v133_v3, %v131_v2  ;;  %v158_v11 = vpack.c.b16 %v134_v5, %v132_v4  ;;  %v129_v15 = vunpack.c.l.b16 %v88_v13  ;;  %v130_v17 = vunpack.c.h.b16 %v88_v13 }
  0x1f   :  { %v105_v26 = vunpack.c.l.b16 %v85_v24  ;;  %v107_v27 = vunpack.c.l.b16 %v86_v25  ;;  %v106_v28 = vunpack.c.h.b16 %v85_v24  ;;  %v108_v29 = vunpack.c.h.b16 %v86_v25 }
  0x20   :  { %v155_v22 = vpack.c.b16 %v129_v15, %v127_v14  ;;  %v156_v23 = vpack.c.b16 %v130_v17, %v128_v16  ;;  %v232_v36 = vand.u32 127, %v231_v32 }
  0x21   :  { %v109_v30 = vpack.c.b16 %v107_v27, %v105_v26  ;;  %v110_v31 = vpack.c.b16 %v108_v29, %v106_v28 }
  0x22   :  { %vm235_vm0 = vcmp.lt.s32.totalorder %v232_v36, 8 }
  0x26   :  { %185 = vmatpush.bf16.xpose.msra.mxu0 %v163_v38  ;;  %199 = vmatpush.bf16.xpose.msra.mxu1 %v164_v39 }
  0x2e   :  { %186 = vmatpush.bf16.xpose.msra.mxu0 %v161_v50  ;;  %200 = vmatpush.bf16.xpose.msra.mxu1 %v162_v51 }
  0x36   :  { %187 = vmatpush.bf16.xpose.msra.mxu0 %v159_v62  ;;  %201 = vmatpush.bf16.xpose.msra.mxu1 %v160_v63 }
  0x3e   :  { %188 = vmatpush.bf16.xpose.msra.mxu0 %v157_v10  ;;  %202 = vmatpush.bf16.xpose.msra.mxu1 %v158_v11 }
  0x46   :  { %189 = vmatpush.bf16.xpose.msra.mxu0 %v155_v22  ;;  %203 = vmatpush.bf16.xpose.msra.mxu1 %v156_v23 }
  0x4e   :  { %190 = vmatpush.bf16.xpose.msra.mxu0 %v109_v30  ;;  %204 = vmatpush.bf16.xpose.msra.mxu1 %v110_v31 }
  0x55   :  { %191 = vmatmul.bf16.vlgmr.msra.gmra.mxu0 %v109_v30  ;;  %205 = vmatmul.bf16.vlgmr.msra.gmra.mxu1 %v110_v31 }
  0xd2   :  { %v192_v33 = vpop.f32.mrf.mxu0  ;;  %v206_v34 = vpop.f32.mrf.mxu1 }
  0xd3   :  { %v207_v35 = vadd.f32 %v206_v34, %v192_v33 }
  0xd5   :  { %v220_v38 = vmul.f32 0.48828125, %v207_v35 }
  0xd7   :  { %v226_v39 = vsub.f32 %v220_v38, %v224_v37  ;;  %222 = vst [vmem:[#allocation8] sm:$0xff] %v220_v38 }
  0xd9   :  { %v238_v43 = vsel %vm235_vm0, %v226_v39, 0.0 }
  0xda   :  { %v194_v40 = vpop.f32.mrf.mxu0  ;;  %v208_v41 = vpop.f32.mrf.mxu1  ;;  %v240_v44 = vmul.f32 %v238_v43, %v238_v43 }
  0xdb   :  { %v209_v42 = vadd.f32 %v208_v41, %v194_v40 }
  0xdc   :  { %243 = vadd.xlane.f32.xlu0 %v240_v44 }
  0xdd   :  { %v221_v45 = vmul.f32 0.48828125, %v209_v42 }
  0xdf   :  { %223 = vst [vmem:[#allocation8 + $0x8] sm:$0xff] %v221_v45 }
  0xe0   :  { %267 = dma.vmem_to_hbm [thread:$0]  %s260_s1, 256, %s262_s28, [#allocation4], %s397_s24, %s397_s24, %s398_s25  }
 0x14f   :  { %v244_v46 = vpop.xlane.xlu0 %243 }
 0x150   :  { %v245_v47 = vrot.slane %v244_v46, 4 }
 0x152   :  { %v246_v48 = vadd.f32 %v245_v47, %v244_v46 }
 0x154   :  { %v247_v49 = vrot.slane %v246_v48, 2 }
 0x156   :  { %v248_v50 = vadd.f32 %v247_v49, %v246_v48 }
 0x158   :  { %v249_v51 = vrot.slane %v248_v50, 1 }
 0x15a   :  { %v250_v52 = vadd.f32 %v249_v51, %v248_v50 }
 0x15c   :  { %290 = vpush %v250_v52 }
 0x18d   :  { %s291_s5 = spop %290 }
 0x18e   :  { %s252_s2 = smul.f32 0.015625, %s291_s5 }
 0x190   :  { %254 = sst [smem:[#allocation9]] %s252_s2 }
 0x191   :  { %276 = dma.smem_to_hbm %s400_s6, 16, %s274_s4, [#allocation5]  }
 0x192   :  { %389 = dma.done.wait [#allocation4], 256  }
 0x193   :  { %390 = vsyncadd [#allocation4], 4294967040 }
 0x194   :  { %391 = dma.done.wait [#allocation5], 16  }
 0x195   :  { %392 = vsyncadd [#allocation5], 4294967280 }
 0x196   :  { %285 = sfence }
 0x197   :  { %286 = vsyncpa [#allocation3], 1 }
 0x198   :  { %287 = vsyncpa [#allocation7], 1 }
 0x199   :  { %288 = vsyncpa [#allocation4], 1 }
 0x19a   :  { %289 = vsyncpa [#allocation5], 1 }

</bundles_post_ra>
